<compile_context>
chip_gen: v6e
topology: v6e:2x2x1
jax: 0.10.0
libtpu: 0.0.40
codegen_flags: <defaults>
</compile_context>

<pallas_src>
import jax
import jax.numpy as jnp
from jax.experimental import pallas as pl
from jax.experimental.pallas import tpu as pltpu


def _ensemble_mlp_kernel(
    x_ref,          # (tb, E*in_dim)
    w1_ref,         # (E*in_dim, E*hidden)   block-diagonal
    w2_ref,         # (E*hidden, E*hidden)   block-diagonal
    w3_ref,         # (E*hidden, E*hidden)   block-diagonal
    w4_ref,         # (E*hidden, E*hidden)   block-diagonal
    w5_ref,         # (E*hidden, 2*E*half)   block-diag, columns = [means | logvars]
    bh_ref,         # (4, E*hidden)          stacked hidden biases
    b5_ref,         # (1, 2*E*half)          head bias, same column permutation
    lv_ref,         # (2, E*half)            row 0 = max_logvar, row 1 = min_logvar
    mean_ref,       # (tb, E*half)           output
    var_ref,        # (tb, E*half)           output
):
    f32 = jnp.float32

    def swish(h):
        return h * jax.nn.sigmoid(h)

    x = x_ref[...]
    h = swish(jnp.dot(x, w1_ref[...], preferred_element_type=f32) + bh_ref[0:1, :])
    h = swish(jnp.dot(h, w2_ref[...], preferred_element_type=f32) + bh_ref[1:2, :])
    h = swish(jnp.dot(h, w3_ref[...], preferred_element_type=f32) + bh_ref[2:3, :])
    h = swish(jnp.dot(h, w4_ref[...], preferred_element_type=f32) + bh_ref[3:4, :])

    out = jnp.dot(h, w5_ref[...], preferred_element_type=f32) + b5_ref[...]

    ehalf = mean_ref.shape[-1]               # E * (obs_dim + rew_dim)
    mean = out[:, :ehalf]
    logvar = out[:, ehalf:]

    max_lv = lv_ref[0:1, :]
    min_lv = lv_ref[1:2, :]
    # logvar = logvar - softplus(logvar - max); logvar = logvar + softplus(min - logvar)
    logvar = logvar - jax.nn.softplus(logvar - max_lv)
    logvar = logvar + jax.nn.softplus(min_lv - logvar)

    mean_ref[...] = mean.astype(mean_ref.dtype)
    var_ref[...] = jnp.exp(logvar).astype(var_ref.dtype)


def _block_diag(w):
    """(E, din, dout) per-member weights -> (E*din, E*dout) block-diagonal."""
    E, din, dout = w.shape
    eye = jnp.eye(E, dtype=w.dtype)
    # [e, i, f, j] = w[e, i, j] * (e == f)  ->  rows e*din+i, cols f*dout+j
    return (w[:, :, None, :] * eye[:, None, :, None]).reshape(E * din, E * dout)


def ensemble_model_forward(x, params, *, batch_tile=512):
    """x: (E, B, obs_dim + act_dim) float32.

    Returns (mean, var), each (E, B, obs_dim + rew_dim), matching
    Ensemble_Model.forward(x, ret_log_var=False).
    """
    E, B, in_dim = x.shape
    (w1, b1), (w2, b2), (w3, b3), (w4, b4), (w5, b5) = params["layers"]
    hidden = w1.shape[-1]
    out_dim = w5.shape[-1]
    half = out_dim // 2

    EI, EH, EHf = E * in_dim, E * hidden, E * half
    EO = 2 * EHf

    # ---- wrapper-side layout prep (pure XLA, done once per call) -------------
    xb = jnp.transpose(x, (1, 0, 2)).reshape(B, EI)          # (B, E*in_dim)

    W1 = _block_diag(w1)                                     # (E*in,  E*h)
    W2 = _block_diag(w2)                                     # (E*h,   E*h)
    W3 = _block_diag(w3)
    W4 = _block_diag(w4)
    # Head: permute columns so [all means | all logvars], still ONE matmul.
    w5m, w5v = w5[:, :, :half], w5[:, :, half:]
    W5 = jnp.concatenate([_block_diag(w5m), _block_diag(w5v)], axis=1)  # (E*h, 2*E*half)

    Bh = jnp.concatenate(
        [b.reshape(1, EH) for b in (b1, b2, b3, b4)], axis=0)            # (4, E*h)
    b5m, b5v = b5[:, :, :half], b5[:, :, half:]
    B5 = jnp.concatenate([b5m.reshape(1, EHf), b5v.reshape(1, EHf)], axis=1)  # (1, 2*E*half)

    lv = jnp.concatenate(
        [jnp.tile(params["max_logvar"], (1, E)),
         jnp.tile(params["min_logvar"], (1, E))], axis=0)                # (2, E*half)

    # ---- grid over batch: weights resident, x/outputs streamed ---------------
    tb = B if B <= batch_tile else batch_tile                # tb==B (full dim) or 512 (8-aligned)
    grid = (pl.cdiv(B, tb),)

    row = lambda i: (i, 0)
    const = lambda i: (0, 0)

    in_specs = [
        pl.BlockSpec((tb, EI), row),       # x
        pl.BlockSpec((EI, EH), const),     # W1
        pl.BlockSpec((EH, EH), const),     # W2
        pl.BlockSpec((EH, EH), const),     # W3
        pl.BlockSpec((EH, EH), const),     # W4
        pl.BlockSpec((EH, EO), const),     # W5
        pl.BlockSpec((4, EH), const),      # stacked hidden biases
        pl.BlockSpec((1, EO), const),      # head bias
        pl.BlockSpec((2, EHf), const),     # logvar bounds
    ]
    out_specs = [
        pl.BlockSpec((tb, EHf), row),      # mean
        pl.BlockSpec((tb, EHf), row),      # var
    ]
    out_shape = [
        jax.ShapeDtypeStruct((B, EHf), jnp.float32),
        jax.ShapeDtypeStruct((B, EHf), jnp.float32),
    ]

    flops = 2 * B * (EI * EH + 3 * EH * EH + EH * EO)
    # sigmoid ~ exp+recip, softplus ~ exp+log, plus final exp
    transcendentals = B * (2 * 4 * EH + 5 * EHf)
    bytes_accessed = 4 * (
        int(xb.size) + int(W1.size) + 3 * int(W2.size) + int(W5.size)
        + int(Bh.size) + int(B5.size) + int(lv.size) + 2 * B * EHf
    )

    mean_p, var_p = pl.pallas_call(
        _ensemble_mlp_kernel,
        grid=grid,
        in_specs=in_specs,
        out_specs=out_specs,
        out_shape=out_shape,
        compiler_params=pltpu.CompilerParams(dimension_semantics=("parallel",)),
        cost_estimate=pl.CostEstimate(
            flops=flops,
            transcendentals=transcendentals,
            bytes_accessed=bytes_accessed,
        ),
    )(xb, W1, W2, W3, W4, W5, Bh, B5, lv)

    # (B, E*half) member-major -> (E, B, half)
    mean = jnp.transpose(mean_p.reshape(B, E, half), (1, 0, 2))
    var = jnp.transpose(var_p.reshape(B, E, half), (1, 0, 2))
    return mean, var


def init_params(key, obs_dim, act_dim, rew_dim, ensemble_size, hidden_dim):
    """Deterministic synthetic init mimicking truncated_normal_init (std ~ 1/(2*sqrt(fan_in)))."""
    out_dim = 2 * (obs_dim + rew_dim)
    dims = [
        (obs_dim + act_dim, hidden_dim),
        (hidden_dim, hidden_dim),
        (hidden_dim, hidden_dim),
        (hidden_dim, hidden_dim),
        (hidden_dim, out_dim),
    ]
    layers = []
    for fan_in, fan_out in dims:
        key, kw = jax.random.split(key)
        std = 1.0 / (2.0 * jnp.sqrt(float(fan_in)))
        w = jax.random.truncated_normal(
            kw, -2.0, 2.0, (ensemble_size, fan_in, fan_out), jnp.float32
        ) * std
        b = jnp.zeros((ensemble_size, 1, fan_out), jnp.float32)
        layers.append((w, b))
    return {
        "layers": layers,
        "max_logvar": jnp.ones((1, obs_dim + rew_dim), jnp.float32) * 0.5,
        "min_logvar": jnp.ones((1, obs_dim + rew_dim), jnp.float32) * -10.0,
    }


def _reference_forward(x, params):
    """Pure-JAX reference reproducing Ensemble_Model.forward semantics."""
    (w1, b1), (w2, b2), (w3, b3), (w4, b4), (w5, b5) = params["layers"]
    swish = lambda h: h * jax.nn.sigmoid(h)
    h = swish(jnp.einsum("ebi,eio->ebo", x, w1) + b1)
    h = swish(jnp.einsum("ebi,eio->ebo", h, w2) + b2)
    h = swish(jnp.einsum("ebi,eio->ebo", h, w3) + b3)
    h = swish(jnp.einsum("ebi,eio->ebo", h, w4) + b4)
    out = jnp.einsum("ebi,eio->ebo", h, w5) + b5
    half = out.shape[-1] // 2
    mean, logvar = out[..., :half], out[..., half:]
    logvar = logvar - jax.nn.softplus(logvar - params["max_logvar"])
    logvar = logvar + jax.nn.softplus(params["min_logvar"] - logvar)
    return mean, jnp.exp(logvar)


if __name__ == "__main__":
    obs_dim, act_dim, rew_dim = 11, 3, 1
    ensemble_size, hidden_dim = 7, 32
    batch = 8

    key = jax.random.PRNGKey(0)
    key, kx = jax.random.split(key)
    x = jax.random.normal(kx, (ensemble_size, batch, obs_dim + act_dim), jnp.float32)
    params = init_params(key, obs_dim, act_dim, rew_dim, ensemble_size, hidden_dim)

    mean, var = jax.block_until_ready(ensemble_model_forward(x, params))

    ref_mean, ref_var = _reference_forward(x, params)
    assert mean.shape == (ensemble_size, batch, obs_dim + rew_dim)
    assert var.shape == (ensemble_size, batch, obs_dim + rew_dim)
    assert jnp.allclose(mean, ref_mean, atol=1e-4, rtol=1e-4)
    assert jnp.allclose(var, ref_var, atol=1e-4, rtol=1e-4)

    print("KERNEL_OK")
</pallas_src>

<mosaic_0001>
module attributes {stable_mosaic.version = 11 : i64} {
  func.func @_ensemble_mlp_kernel(%arg0: i32, %arg1: memref<8x98xf32, #tpu.memory_space<vmem>>, %arg2: memref<98x224xf32, #tpu.memory_space<vmem>>, %arg3: memref<224x224xf32, #tpu.memory_space<vmem>>, %arg4: memref<224x224xf32, #tpu.memory_space<vmem>>, %arg5: memref<224x224xf32, #tpu.memory_space<vmem>>, %arg6: memref<224x168xf32, #tpu.memory_space<vmem>>, %arg7: memref<4x224xf32, #tpu.memory_space<vmem>>, %arg8: memref<1x168xf32, #tpu.memory_space<vmem>>, %arg9: memref<2x84xf32, #tpu.memory_space<vmem>>, %arg10: memref<8x84xf32, #tpu.memory_space<vmem>>, %arg11: memref<8x84xf32, #tpu.memory_space<vmem>>) attributes {dimension_semantics = [#tpu.dimension_semantics<parallel>], iteration_bounds = array<i64: 1>, scalar_prefetch = 0 : i64, scratch_operands = 0 : i64, tpu.core_type = #tpu.core_type<tc>, window_params = [{transform_indices = @transform_0, window_bounds = array<i64: 8, 98>}, {pipeline_mode = #tpu.pipeline_mode<synchronous>, transform_indices = @transform_1, window_bounds = array<i64: 98, 224>}, {pipeline_mode = #tpu.pipeline_mode<synchronous>, transform_indices = @transform_2, window_bounds = array<i64: 224, 224>}, {pipeline_mode = #tpu.pipeline_mode<synchronous>, transform_indices = @transform_3, window_bounds = array<i64: 224, 224>}, {pipeline_mode = #tpu.pipeline_mode<synchronous>, transform_indices = @transform_4, window_bounds = array<i64: 224, 224>}, {pipeline_mode = #tpu.pipeline_mode<synchronous>, transform_indices = @transform_5, window_bounds = array<i64: 224, 168>}, {pipeline_mode = #tpu.pipeline_mode<synchronous>, transform_indices = @transform_6, window_bounds = array<i64: 4, 224>}, {pipeline_mode = #tpu.pipeline_mode<synchronous>, transform_indices = @transform_7, window_bounds = array<i64: 1, 168>}, {pipeline_mode = #tpu.pipeline_mode<synchronous>, transform_indices = @transform_8, window_bounds = array<i64: 2, 84>}, {transform_indices = @transform_9, window_bounds = array<i64: 8, 84>}, {transform_indices = @transform_10, window_bounds = array<i64: 8, 84>}]} {
    %c0 = arith.constant 0 : index
    %c0_0 = arith.constant 0 : index
    %0 = vector.load %arg1[%c0, %c0_0] : memref<8x98xf32, #tpu.memory_space<vmem>>, vector<8x98xf32>
    %c0_1 = arith.constant 0 : index
    %c0_2 = arith.constant 0 : index
    %1 = vector.load %arg2[%c0_1, %c0_2] : memref<98x224xf32, #tpu.memory_space<vmem>>, vector<98x224xf32>
    %cst = arith.constant dense<0.000000e+00> : vector<8x224xf32>
    %2 = tpu.matmul %0, %1, %cst {dimension_numbers = #tpu.dot_dimension_numbers<[1], [0], [0], [1], [0, 0, 1, 1], [], []>} : vector<8x98xf32>, vector<98x224xf32>, vector<8x224xf32> -> vector<8x224xf32>
    %c0_3 = arith.constant 0 : index
    %c0_4 = arith.constant 0 : index
    %3 = vector.load %arg7[%c0_3, %c0_4] : memref<4x224xf32, #tpu.memory_space<vmem>>, vector<1x224xf32>
    %4 = vector.broadcast %3 : vector<1x224xf32> to vector<8x224xf32>
    %5 = arith.addf %2, %4 : vector<8x224xf32>
    %6 = arith.negf %5 : vector<8x224xf32>
    %7 = math.exp %6 : vector<8x224xf32>
    %cst_5 = arith.constant 1.000000e+00 : f32
    %8 = vector.broadcast %cst_5 : f32 to vector<8x224xf32>
    %9 = arith.addf %8, %7 : vector<8x224xf32>
    %10 = arith.divf %8, %9 : vector<8x224xf32>
    %11 = arith.mulf %5, %10 : vector<8x224xf32>
    %c0_6 = arith.constant 0 : index
    %c0_7 = arith.constant 0 : index
    %12 = vector.load %arg3[%c0_6, %c0_7] : memref<224x224xf32, #tpu.memory_space<vmem>>, vector<224x224xf32>
    %cst_8 = arith.constant dense<0.000000e+00> : vector<8x224xf32>
    %13 = tpu.matmul %11, %12, %cst_8 {dimension_numbers = #tpu.dot_dimension_numbers<[1], [0], [0], [1], [0, 0, 1, 1], [], []>} : vector<8x224xf32>, vector<224x224xf32>, vector<8x224xf32> -> vector<8x224xf32>
    %c1 = arith.constant 1 : index
    %c0_9 = arith.constant 0 : index
    %14 = vector.load %arg7[%c1, %c0_9] : memref<4x224xf32, #tpu.memory_space<vmem>>, vector<1x224xf32>
    %15 = vector.broadcast %14 : vector<1x224xf32> to vector<8x224xf32>
    %16 = arith.addf %13, %15 : vector<8x224xf32>
    %17 = arith.negf %16 : vector<8x224xf32>
    %18 = math.exp %17 : vector<8x224xf32>
    %cst_10 = arith.constant 1.000000e+00 : f32
    %19 = vector.broadcast %cst_10 : f32 to vector<8x224xf32>
    %20 = arith.addf %19, %18 : vector<8x224xf32>
    %21 = arith.divf %19, %20 : vector<8x224xf32>
    %22 = arith.mulf %16, %21 : vector<8x224xf32>
    %c0_11 = arith.constant 0 : index
    %c0_12 = arith.constant 0 : index
    %23 = vector.load %arg4[%c0_11, %c0_12] : memref<224x224xf32, #tpu.memory_space<vmem>>, vector<224x224xf32>
    %cst_13 = arith.constant dense<0.000000e+00> : vector<8x224xf32>
    %24 = tpu.matmul %22, %23, %cst_13 {dimension_numbers = #tpu.dot_dimension_numbers<[1], [0], [0], [1], [0, 0, 1, 1], [], []>} : vector<8x224xf32>, vector<224x224xf32>, vector<8x224xf32> -> vector<8x224xf32>
    %c2 = arith.constant 2 : index
    %c0_14 = arith.constant 0 : index
    %25 = vector.load %arg7[%c2, %c0_14] : memref<4x224xf32, #tpu.memory_space<vmem>>, vector<1x224xf32>
    %26 = vector.broadcast %25 : vector<1x224xf32> to vector<8x224xf32>
    %27 = arith.addf %24, %26 : vector<8x224xf32>
    %28 = arith.negf %27 : vector<8x224xf32>
    %29 = math.exp %28 : vector<8x224xf32>
    %cst_15 = arith.constant 1.000000e+00 : f32
    %30 = vector.broadcast %cst_15 : f32 to vector<8x224xf32>
    %31 = arith.addf %30, %29 : vector<8x224xf32>
    %32 = arith.divf %30, %31 : vector<8x224xf32>
    %33 = arith.mulf %27, %32 : vector<8x224xf32>
    %c0_16 = arith.constant 0 : index
    %c0_17 = arith.constant 0 : index
    %34 = vector.load %arg5[%c0_16, %c0_17] : memref<224x224xf32, #tpu.memory_space<vmem>>, vector<224x224xf32>
    %cst_18 = arith.constant dense<0.000000e+00> : vector<8x224xf32>
    %35 = tpu.matmul %33, %34, %cst_18 {dimension_numbers = #tpu.dot_dimension_numbers<[1], [0], [0], [1], [0, 0, 1, 1], [], []>} : vector<8x224xf32>, vector<224x224xf32>, vector<8x224xf32> -> vector<8x224xf32>
    %c3 = arith.constant 3 : index
    %c0_19 = arith.constant 0 : index
    %36 = vector.load %arg7[%c3, %c0_19] : memref<4x224xf32, #tpu.memory_space<vmem>>, vector<1x224xf32>
    %37 = vector.broadcast %36 : vector<1x224xf32> to vector<8x224xf32>
    %38 = arith.addf %35, %37 : vector<8x224xf32>
    %39 = arith.negf %38 : vector<8x224xf32>
    %40 = math.exp %39 : vector<8x224xf32>
    %cst_20 = arith.constant 1.000000e+00 : f32
    %41 = vector.broadcast %cst_20 : f32 to vector<8x224xf32>
    %42 = arith.addf %41, %40 : vector<8x224xf32>
    %43 = arith.divf %41, %42 : vector<8x224xf32>
    %44 = arith.mulf %38, %43 : vector<8x224xf32>
    %c0_21 = arith.constant 0 : index
    %c0_22 = arith.constant 0 : index
    %45 = vector.load %arg6[%c0_21, %c0_22] : memref<224x168xf32, #tpu.memory_space<vmem>>, vector<224x168xf32>
    %cst_23 = arith.constant dense<0.000000e+00> : vector<8x168xf32>
    %46 = tpu.matmul %44, %45, %cst_23 {dimension_numbers = #tpu.dot_dimension_numbers<[1], [0], [0], [1], [0, 0, 1, 1], [], []>} : vector<8x224xf32>, vector<224x168xf32>, vector<8x168xf32> -> vector<8x168xf32>
    %c0_24 = arith.constant 0 : index
    %c0_25 = arith.constant 0 : index
    %47 = vector.load %arg8[%c0_24, %c0_25] : memref<1x168xf32, #tpu.memory_space<vmem>>, vector<1x168xf32>
    %48 = vector.broadcast %47 : vector<1x168xf32> to vector<8x168xf32>
    %49 = arith.addf %46, %48 : vector<8x168xf32>
    %50 = vector.extract_strided_slice %49 {offsets = [0, 0], sizes = [8, 84], strides = [1, 1]} : vector<8x168xf32> to vector<8x84xf32>
    %51 = vector.extract_strided_slice %49 {offsets = [0, 84], sizes = [8, 84], strides = [1, 1]} : vector<8x168xf32> to vector<8x84xf32>
    %c0_26 = arith.constant 0 : index
    %c0_27 = arith.constant 0 : index
    %52 = vector.load %arg9[%c0_26, %c0_27] : memref<2x84xf32, #tpu.memory_space<vmem>>, vector<1x84xf32>
    %c1_28 = arith.constant 1 : index
    %c0_29 = arith.constant 0 : index
    %53 = vector.load %arg9[%c1_28, %c0_29] : memref<2x84xf32, #tpu.memory_space<vmem>>, vector<1x84xf32>
    %54 = vector.broadcast %52 : vector<1x84xf32> to vector<8x84xf32>
    %55 = arith.subf %51, %54 : vector<8x84xf32>
    %cst_30 = arith.constant 0.000000e+00 : f32
    %56 = vector.broadcast %cst_30 : f32 to vector<8x84xf32>
    %57 = arith.maximumf %55, %56 : vector<8x84xf32>
    %58 = vector.broadcast %cst_30 : f32 to vector<8x84xf32>
    %59 = arith.subf %55, %58 : vector<8x84xf32>
    %60 = arith.cmpf one, %59, %59 : vector<8x84xf32>
    %61 = vector.broadcast %cst_30 : f32 to vector<8x84xf32>
    %62 = arith.addf %55, %61 : vector<8x84xf32>
    %63 = math.absf %59 : vector<8x84xf32>
    %cst_31 = arith.constant 0.000000e+00 : f32
    %64 = vector.broadcast %cst_31 : f32 to vector<8x84xf32>
    %65 = arith.subf %64, %63 : vector<8x84xf32>
    %66 = math.exp %65 : vector<8x84xf32>
    %67 = math.log1p %66 : vector<8x84xf32>
    %68 = arith.addf %57, %67 : vector<8x84xf32>
    %69 = arith.select %60, %62, %68 : vector<8x84xi1>, vector<8x84xf32>
    %70 = arith.subf %51, %69 : vector<8x84xf32>
    %71 = vector.broadcast %53 : vector<1x84xf32> to vector<8x84xf32>
    %72 = arith.subf %71, %70 : vector<8x84xf32>
    %cst_32 = arith.constant 0.000000e+00 : f32
    %73 = vector.broadcast %cst_32 : f32 to vector<8x84xf32>
    %74 = arith.maximumf %72, %73 : vector<8x84xf32>
    %75 = vector.broadcast %cst_32 : f32 to vector<8x84xf32>
    %76 = arith.subf %72, %75 : vector<8x84xf32>
    %77 = arith.cmpf one, %76, %76 : vector<8x84xf32>
    %78 = vector.broadcast %cst_32 : f32 to vector<8x84xf32>
    %79 = arith.addf %72, %78 : vector<8x84xf32>
    %80 = math.absf %76 : vector<8x84xf32>
    %cst_33 = arith.constant 0.000000e+00 : f32
    %81 = vector.broadcast %cst_33 : f32 to vector<8x84xf32>
    %82 = arith.subf %81, %80 : vector<8x84xf32>
    %83 = math.exp %82 : vector<8x84xf32>
    %84 = math.log1p %83 : vector<8x84xf32>
    %85 = arith.addf %74, %84 : vector<8x84xf32>
    %86 = arith.select %77, %79, %85 : vector<8x84xi1>, vector<8x84xf32>
    %87 = arith.addf %70, %86 : vector<8x84xf32>
    %c0_34 = arith.constant 0 : index
    %c0_35 = arith.constant 0 : index
    %88 = vector.load %arg10[%c0_34, %c0_35] : memref<8x84xf32, #tpu.memory_space<vmem>>, vector<8x84xf32>
    tpu.vector_store %arg10[%c0_34, %c0_35], %50 {strides = array<i32>} : memref<8x84xf32, #tpu.memory_space<vmem>>, vector<8x84xf32>,
    %89 = math.exp %87 : vector<8x84xf32>
    %c0_36 = arith.constant 0 : index
    %c0_37 = arith.constant 0 : index
    %90 = vector.load %arg11[%c0_36, %c0_37] : memref<8x84xf32, #tpu.memory_space<vmem>>, vector<8x84xf32>
    tpu.vector_store %arg11[%c0_36, %c0_37], %89 {strides = array<i32>} : memref<8x84xf32, #tpu.memory_space<vmem>>, vector<8x84xf32>,
    return
  }
  func.func @transform_0(%arg0: i32) -> (i32, i32) {
    %c0_i32 = arith.constant 0 : i32
    %c0_i32_0 = arith.constant 0 : i32
    return %arg0, %c0_i32 : i32, i32
  }
  func.func @transform_1(%arg0: i32) -> (i32, i32) {
    %c0_i32 = arith.constant 0 : i32
    %c0_i32_0 = arith.constant 0 : i32
    %c0_i32_1 = arith.constant 0 : i32
    return %c0_i32, %c0_i32_0 : i32, i32
  }
  func.func @transform_2(%arg0: i32) -> (i32, i32) {
    %c0_i32 = arith.constant 0 : i32
    %c0_i32_0 = arith.constant 0 : i32
    %c0_i32_1 = arith.constant 0 : i32
    return %c0_i32, %c0_i32_0 : i32, i32
  }
  func.func @transform_3(%arg0: i32) -> (i32, i32) {
    %c0_i32 = arith.constant 0 : i32
    %c0_i32_0 = arith.constant 0 : i32
    %c0_i32_1 = arith.constant 0 : i32
    return %c0_i32, %c0_i32_0 : i32, i32
  }
  func.func @transform_4(%arg0: i32) -> (i32, i32) {
    %c0_i32 = arith.constant 0 : i32
    %c0_i32_0 = arith.constant 0 : i32
    %c0_i32_1 = arith.constant 0 : i32
    return %c0_i32, %c0_i32_0 : i32, i32
  }
  func.func @transform_5(%arg0: i32) -> (i32, i32) {
    %c0_i32 = arith.constant 0 : i32
    %c0_i32_0 = arith.constant 0 : i32
    %c0_i32_1 = arith.constant 0 : i32
    return %c0_i32, %c0_i32_0 : i32, i32
  }
  func.func @transform_6(%arg0: i32) -> (i32, i32) {
    %c0_i32 = arith.constant 0 : i32
    %c0_i32_0 = arith.constant 0 : i32
    %c0_i32_1 = arith.constant 0 : i32
    return %c0_i32, %c0_i32_0 : i32, i32
  }
  func.func @transform_7(%arg0: i32) -> (i32, i32) {
    %c0_i32 = arith.constant 0 : i32
    %c0_i32_0 = arith.constant 0 : i32
    %c0_i32_1 = arith.constant 0 : i32
    return %c0_i32, %c0_i32_0 : i32, i32
  }
  func.func @transform_8(%arg0: i32) -> (i32, i32) {
    %c0_i32 = arith.constant 0 : i32
    %c0_i32_0 = arith.constant 0 : i32
    %c0_i32_1 = arith.constant 0 : i32
    return %c0_i32, %c0_i32_0 : i32, i32
  }
  func.func @transform_9(%arg0: i32) -> (i32, i32) {
    %c0_i32 = arith.constant 0 : i32
    %c0_i32_0 = arith.constant 0 : i32
    return %arg0, %c0_i32 : i32, i32
  }
  func.func @transform_10(%arg0: i32) -> (i32, i32) {
    %c0_i32 = arith.constant 0 : i32
    %c0_i32_0 = arith.constant 0 : i32
    return %arg0, %c0_i32 : i32, i32
  }
}

</mosaic_0001>

<bundles_post_ra>
// kernel: tpu_custom_call.1
= control target key start
LH: loop header
LB: loop body
LE: loop exit
PB: predicated region body
PF: predicated region fallthrough
CT: control target
= control target key end

     0   :  { %16 = vsyncpa [#allocation3], 0  ;;  %s1653_s0 = inlined_call_operand.vmem [shape: f32[8,98], index: 0, kind: input, shape index: {}]   ;;  %s1654_s1 = inlined_call_operand.vmem [shape: f32[98,224], index: 1, kind: input, shape index: {}]   ;;  %s1655_s2 = inlined_call_operand.vmem [shape: f32[224,224], index: 2, kind: input, shape index: {}]   ;;  %s1656_s3 = inlined_call_operand.hbm [shape: f32[224,224], index: 3, kind: input, shape index: {}]   ;;  %s1657_s4 = inlined_call_operand.hbm [shape: f32[224,224], index: 4, kind: input, shape index: {}]   ;;  %s1658_s5 = inlined_call_operand.vmem [shape: f32[224,168], index: 5, kind: input, shape index: {}]   ;;  %s1659_s6 = inlined_call_operand.vmem [shape: f32[4,224], index: 6, kind: input, shape index: {}]   ;;  %s1660_s7 = inlined_call_operand.vmem [shape: f32[1,168], index: 7, kind: input, shape index: {}]   ;;  %s1661_s8 = inlined_call_operand.vmem [shape: f32[2,84], index: 8, kind: input, shape index: {}]   ;;  %s1662_s9 = inlined_call_operand.hbm [shape: f32[8,84], index: 9, kind: output, shape index: {0}]   ;;  %s1663_s10 = inlined_call_operand.hbm [shape: f32[8,84], index: 10, kind: output, shape index: {1}]  }
   0x1   :  { %17 = vsyncpa [#allocation6], 0 }
   0x2   :  { %18 = vsyncpa [#allocation4], 0 }
   0x3   :  { %19 = vsyncpa [#allocation9], 0  ;;  %s1111_s13 = smov [#allocation2]  }
   0x4   :  { %s31_s14 = sshll.u32 %s1111_s13, 4  ;;  %s32_s14 = int_to_ptr.vmem [resolvable:$true] %s31_s14 }
   0x5   :  { %s1031_s15 = scalar_lea.vmem %s32_s14, 7168  ;;  %p1036_p1 = scmp.lt.s32.totalorder %s32_s14, %s32_s14 }
   0x6   :  { %p1032_p0 = scmp.ne.s32.totalorder %s32_s14, %s1031_s15  ;;  %p1037_p2 = scmp.lt.s32.totalorder %s1031_s15, %s1031_s15 }
   0x8   :  { %p1038_p3 = por %p1037_p2, %p1036_p1 }
   0xa   :  { %p1039_p4 = pnand %p1038_p3, %p1032_p0 }
   0xc   :  { %1042 = shalt.err (!%p1039_p4)
}
   0xd   :  { %s1112_s16 = smov 256   ;;  %s1113_s17 = smov 16  }
   0xe   :  { %37 = dma.hbm_to_vmem [thread:$0]  %s1656_s3, 7168, %s32_s14, [#allocation3], %s1112_s16, %s1112_s16, %s1113_s17  }
   0xf   :  { %s1114_s20 = smov [#allocation5]  }
  0x10   :  { %s43_s21 = sshll.u32 %s1114_s20, 4  ;;  %s44_s21 = int_to_ptr.vmem [resolvable:$true] %s43_s21 }
  0x11   :  { %s1051_s22 = scalar_lea.vmem %s44_s21, 7168  ;;  %p1056_p6 = scmp.lt.s32.totalorder %s44_s21, %s44_s21 }
  0x12   :  { %p1052_p5 = scmp.ne.s32.totalorder %s44_s21, %s1051_s22  ;;  %p1057_p7 = scmp.lt.s32.totalorder %s1051_s22, %s1051_s22 }
  0x14   :  { %p1058_p8 = por %p1057_p7, %p1056_p6 }
  0x16   :  { %p1059_p9 = pnand %p1058_p8, %p1052_p5 }
  0x18   :  { %1062 = shalt.err (!%p1059_p9)
}
  0x19   :  { %49 = dma.hbm_to_vmem [thread:$0]  %s1657_s4, 7168, %s44_s21, [#allocation6], %s1112_s16, %s1112_s16, %s1113_s17  }
  0x1a   :  { %1103 = dma.done.wait [#allocation3], 7168  }
  0x1b   :  { %1104 = vsyncadd [#allocation3], 4294960128 }
  0x1c   :  { %1105 = dma.done.wait [#allocation6], 7168  }
  0x1d   :  { %1106 = vsyncadd [#allocation6], 4294960128  ;;  %v1115_v0 = vmov 0.0   ;;  %vm107_vm0 = vcmask 1041408   ;;  %v90_v1 = vld [vmem:[%s1654_s1 + $0xc8] sm:$0x3] }
  0x1e   :  { %178 = vmatprep.mubr.f32.mxu0 %v1115_v0  ;;  %v89_v2 = vld [vmem:[%s1654_s1 + $0xc0] sm:$0x3]  ;;  %v88_v3 = vld [vmem:[%s1654_s1 + $0xb8] sm:$0xff]  ;;  %946 = vmatprep.subr.msk.mxu0 %vm107_vm0, %v90_v1  ;;  %v87_v4 = vld [vmem:[%s1654_s1 + $0xb0] sm:$0xff]  ;;  %vm103_vm1 = vcmask 801792   ;;  %vm268_vm2 = vcmask 785408  }
  0x1f   :  { %947 = vmatpush1.msk.msra.mxu0 %vm107_vm0, %v89_v2  ;;  %v86_v5 = vld [vmem:[%s1654_s1 + $0xa8] sm:$0xff]  ;;  %v85_v6 = vld [vmem:[%s1654_s1 + $0xa0] sm:$0xff]  ;;  %v84_v7 = vld [vmem:[%s1654_s1 + $0x98] sm:$0xff]  ;;  %s1116_s25 = smov 84   ;;  %vm901_vm3 = vcmask 687104   ;;  %vm873_vm8 = vcmask 359424  }
  0x20   :  { %122 = vmatprep.subr.mxu0 %v88_v3  ;;  %v83_v8 = vld [vmem:[%s1654_s1 + $0x90] sm:$0xff]  ;;  %v82_v9 = vld [vmem:[%s1654_s1 + $0x88] sm:$0xff]  ;;  %v81_v10 = vld [vmem:[%s1654_s1 + $0x80] sm:$0xff] }
  0x21   :  { %123 = vmatpush1.msra.mxu0 %v87_v4  ;;  %v80_v11 = vld [vmem:[%s1654_s1 + $0x78] sm:$0xff]  ;;  %v79_v12 = vld [vmem:[%s1654_s1 + $0x70] sm:$0xff]  ;;  %v228_v15 = vld [vmem:[%s1655_s2 + $0xe8] sm:$0xff] }
  0x22   :  { %124 = vmatprep.subr.mxu0 %v86_v5  ;;  %v230_v13 = vld [vmem:[%s1655_s2 + $0xf8] sm:$0xff]  ;;  %v229_v14 = vld [vmem:[%s1655_s2 + $0xf0] sm:$0xff]  ;;  %v78_v16 = vld [vmem:[%s1654_s1 + $0x68] sm:$0xff] }
  0x23   :  { %125 = vmatpush1.msra.mxu0 %v85_v6  ;;  %272 = vmatprep.subr.mxu1 %v230_v13  ;;  %v227_v17 = vld [vmem:[%s1655_s2 + $0xe0] sm:$0xff]  ;;  %v226_v19 = vld [vmem:[%s1655_s2 + $0xd8] sm:$0xff]  ;;  %v225_v21 = vld [vmem:[%s1655_s2 + $0xd0] sm:$0xff] }
  0x24   :  { %126 = vmatprep.subr.mxu0 %v84_v7  ;;  %v77_v18 = vld [vmem:[%s1654_s1 + $0x60] sm:$0xff]  ;;  %273 = vmatpush1.msra.mxu1 %v229_v14  ;;  %v76_v20 = vld [vmem:[%s1654_s1 + $0x58] sm:$0xff]  ;;  %v75_v22 = vld [vmem:[%s1654_s1 + $0x50] sm:$0xff] }
  0x25   :  { %127 = vmatpush1.msra.mxu0 %v83_v8  ;;  %274 = vmatprep.subr.mxu1 %v228_v15  ;;  %v224_v23 = vld [vmem:[%s1655_s2 + $0xc8] sm:$0xff]  ;;  %v223_v25 = vld [vmem:[%s1655_s2 + $0xc0] sm:$0xff]  ;;  %v222_v27 = vld [vmem:[%s1655_s2 + $0xb8] sm:$0xff] }
  0x26   :  { %128 = vmatprep.subr.mxu0 %v82_v9  ;;  %275 = vmatpush1.msra.mxu1 %v227_v17  ;;  %v74_v24 = vld [vmem:[%s1654_s1 + $0x48] sm:$0xff]  ;;  %v73_v26 = vld [vmem:[%s1654_s1 + $0x40] sm:$0xff]  ;;  %v72_v28 = vld [vmem:[%s1654_s1 + $0x38] sm:$0xff] }
  0x27   :  { %129 = vmatpush1.msra.mxu0 %v81_v10  ;;  %276 = vmatprep.subr.mxu1 %v226_v19  ;;  %v221_v29 = vld [vmem:[%s1655_s2 + $0xb0] sm:$0xff]  ;;  %v220_v31 = vld [vmem:[%s1655_s2 + $0xa8] sm:$0xff]  ;;  %v219_v33 = vld [vmem:[%s1655_s2 + $0xa0] sm:$0xff] }
  0x28   :  { %130 = vmatprep.subr.mxu0 %v80_v11  ;;  %277 = vmatpush1.msra.mxu1 %v225_v21  ;;  %v71_v30 = vld [vmem:[%s1654_s1 + $0x30] sm:$0xff]  ;;  %v70_v32 = vld [vmem:[%s1654_s1 + $0x28] sm:$0xff]  ;;  %v69_v34 = vld [vmem:[%s1654_s1 + $0x20] sm:$0xff] }
  0x29   :  { %131 = vmatpush1.msra.mxu0 %v79_v12  ;;  %278 = vmatprep.subr.mxu1 %v224_v23  ;;  %v218_v35 = vld [vmem:[%s1655_s2 + $0x98] sm:$0xff]  ;;  %v217_v37 = vld [vmem:[%s1655_s2 + $0x90] sm:$0xff]  ;;  %v216_v39 = vld [vmem:[%s1655_s2 + $0x88] sm:$0xff] }
  0x2a   :  { %132 = vmatprep.subr.mxu0 %v78_v16  ;;  %279 = vmatpush1.msra.mxu1 %v223_v25  ;;  %v68_v36 = vld [vmem:[%s1654_s1 + $0x18] sm:$0xff]  ;;  %v67_v38 = vld [vmem:[%s1654_s1 + $0x10] sm:$0xff]  ;;  %v66_v40 = vld [vmem:[%s1654_s1 + $0x8] sm:$0xff] }
  0x2b   :  { %133 = vmatpush1.msra.mxu0 %v77_v18  ;;  %280 = vmatprep.subr.mxu1 %v222_v27  ;;  %v215_v41 = vld [vmem:[%s1655_s2 + $0x80] sm:$0xff]  ;;  %v214_v44 = vld [vmem:[%s1655_s2 + $0x78] sm:$0xff]  ;;  %v213_v45 = vld [vmem:[%s1655_s2 + $0x70] sm:$0xff] }
  0x2c   :  { %134 = vmatprep.subr.mxu0 %v76_v20  ;;  %281 = vmatpush1.msra.mxu1 %v221_v29  ;;  %v65_v42 = vld [vmem:[%s1654_s1] sm:$0xff]  ;;  %v212_v46 = vld [vmem:[%s1655_s2 + $0x68] sm:$0xff]  ;;  %v210_v48 = vld [vmem:[%s1655_s2 + $0x58] sm:$0xff] }
  0x2d   :  { %135 = vmatpush1.msra.mxu0 %v75_v22  ;;  %282 = vmatprep.subr.mxu1 %v220_v31  ;;  %v64_v43 = vld [vmem:[%s1653_s0] sm:$0xff]  ;;  %v209_v49 = vld [vmem:[%s1655_s2 + $0x50] sm:$0xff]  ;;  %v208_v50 = vld [vmem:[%s1655_s2 + $0x48] sm:$0xff] }
  0x2e   :  { %136 = vmatprep.subr.mxu0 %v74_v24  ;;  %283 = vmatpush1.msra.mxu1 %v219_v33  ;;  %v211_v47 = vld [vmem:[%s1655_s2 + $0x60] sm:$0xff]  ;;  %v206_v52 = vld [vmem:[%s1655_s2 + $0x38] sm:$0xff]  ;;  %v205_v53 = vld [vmem:[%s1655_s2 + $0x30] sm:$0xff] }
  0x2f   :  { %137 = vmatpush1.msra.mxu0 %v73_v26  ;;  %284 = vmatprep.subr.mxu1 %v218_v35  ;;  %v207_v51 = vld [vmem:[%s1655_s2 + $0x40] sm:$0xff]  ;;  %v204_v54 = vld [vmem:[%s1655_s2 + $0x28] sm:$0xff]  ;;  %v202_v56 = vld [vmem:[%s1655_s2 + $0x18] sm:$0xff] }
  0x30   :  { %138 = vmatprep.subr.mxu0 %v72_v28  ;;  %285 = vmatpush1.msra.mxu1 %v217_v37  ;;  %v203_v55 = vld [vmem:[%s1655_s2 + $0x20] sm:$0xff]  ;;  %v201_v57 = vld [vmem:[%s1655_s2 + $0x10] sm:$0xff]  ;;  %v200_v58 = vld [vmem:[%s1655_s2 + $0x8] sm:$0xff] }
  0x31   :  { %139 = vmatpush1.msra.mxu0 %v71_v30  ;;  %286 = vmatprep.subr.mxu1 %v216_v39  ;;  %v199_v59 = vld [vmem:[%s1655_s2] sm:$0xff]  ;;  %v254_v60 = vld [vmem:[%s1655_s2 + $0x1b8] sm:$0xff]  ;;  %v253_v61 = vld [vmem:[%s1655_s2 + $0x1b0] sm:$0xff] }
  0x32   :  { %140 = vmatprep.subr.mxu0 %v70_v32  ;;  %287 = vmatpush1.msra.mxu1 %v215_v41  ;;  %v252_v62 = vld [vmem:[%s1655_s2 + $0x1a8] sm:$0xff]  ;;  %v251_v63 = vld [vmem:[%s1655_s2 + $0x1a0] sm:$0xff]  ;;  %v250_v0 = vld [vmem:[%s1655_s2 + $0x198] sm:$0xff] }
  0x33   :  { %141 = vmatpush1.msra.mxu0 %v69_v34  ;;  %288 = vmatprep.subr.mxu1 %v214_v44  ;;  %v249_v1 = vld [vmem:[%s1655_s2 + $0x190] sm:$0xff]  ;;  %v248_v2 = vld [vmem:[%s1655_s2 + $0x188] sm:$0xff]  ;;  %v247_v3 = vld [vmem:[%s1655_s2 + $0x180] sm:$0xff] }
  0x34   :  { %142 = vmatprep.subr.mxu0 %v68_v36  ;;  %289 = vmatpush1.msra.mxu1 %v213_v45  ;;  %v246_v4 = vld [vmem:[%s1655_s2 + $0x178] sm:$0xff]  ;;  %v245_v5 = vld [vmem:[%s1655_s2 + $0x170] sm:$0xff]  ;;  %v244_v6 = vld [vmem:[%s1655_s2 + $0x168] sm:$0xff]  ;;  %v93_v36 = vlaneseq }
  0x35   :  { %143 = vmatpush1.msra.mxu0 %v67_v38  ;;  %290 = vmatprep.subr.mxu1 %v212_v46  ;;  %v243_v7 = vld [vmem:[%s1655_s2 + $0x160] sm:$0xff]  ;;  %v242_v8 = vld [vmem:[%s1655_s2 + $0x158] sm:$0xff]  ;;  %v241_v9 = vld [vmem:[%s1655_s2 + $0x150] sm:$0xff] }
  0x36   :  { %144 = vmatprep.subr.mxu0 %v66_v40  ;;  %291 = vmatpush1.msra.mxu1 %v211_v47  ;;  %v240_v10 = vld [vmem:[%s1655_s2 + $0x148] sm:$0xff]  ;;  %v239_v11 = vld [vmem:[%s1655_s2 + $0x140] sm:$0xff]  ;;  %v238_v12 = vld [vmem:[%s1655_s2 + $0x138] sm:$0xff]  ;;  %v94_v37 = vshrl.u32 %v93_v36, 7 }
  0x37   :  { %145 = vmatpush1.msra.mxu0 %v65_v42  ;;  %292 = vmatprep.subr.mxu1 %v210_v48  ;;  %v237_v13 = vld [vmem:[%s1655_s2 + $0x130] sm:$0xff]  ;;  %v236_v14 = vld [vmem:[%s1655_s2 + $0x128] sm:$0xff]  ;;  %v235_v15 = vld [vmem:[%s1655_s2 + $0x120] sm:$0xff] }
  0x38   :  { %948 = vmatmul.mubr.msk.f32.vlgmr.msra.gmra.mxu0 %vm103_vm1, %v64_v43  ;;  %293 = vmatpush1.msra.mxu1 %v209_v49  ;;  %v234_v16 = vld [vmem:[%s1655_s2 + $0x118] sm:$0xff]  ;;  %v233_v17 = vld [vmem:[%s1655_s2 + $0x110] sm:$0xff]  ;;  %v232_v18 = vld [vmem:[%s1655_s2 + $0x108] sm:$0xff]  ;;  %v1430_v38 = vsub.s32 0, %v94_v37  ;;  %v1435_v40 = vsub.s32 1, %v94_v37 }
  0x39   :  { %294 = vmatprep.subr.mxu1 %v208_v50  ;;  %v231_v19 = vld [vmem:[%s1655_s2 + $0x100] sm:$0xff]  ;;  %v388_v20 = vld [vmem:[#allocation2 + $0xf8] sm:$0xff]  ;;  %v387_v21 = vld [vmem:[#allocation2 + $0xf0] sm:$0xff] }
  0x3a   :  { %295 = vmatpush1.msra.mxu1 %v207_v51  ;;  %v386_v22 = vld [vmem:[#allocation2 + $0xe8] sm:$0xff]  ;;  %429 = vmatprep.subr.mxu0 %v388_v20  ;;  %v385_v23 = vld [vmem:[#allocation2 + $0xe0] sm:$0xff]  ;;  %v384_v24 = vld [vmem:[#allocation2 + $0xd8] sm:$0xff] }
  0x3b   :  { %296 = vmatprep.subr.mxu1 %v206_v52  ;;  %430 = vmatpush1.msra.mxu0 %v387_v21  ;;  %v383_v25 = vld [vmem:[#allocation2 + $0xd0] sm:$0xff]  ;;  %v382_v26 = vld [vmem:[#allocation2 + $0xc8] sm:$0xff]  ;;  %v381_v27 = vld [vmem:[#allocation2 + $0xc0] sm:$0xff] }
  0x3c   :  { %297 = vmatpush1.msra.mxu1 %v205_v53  ;;  %431 = vmatprep.subr.mxu0 %v386_v22  ;;  %v380_v28 = vld [vmem:[#allocation2 + $0xb8] sm:$0xff]  ;;  %v379_v29 = vld [vmem:[#allocation2 + $0xb0] sm:$0xff]  ;;  %v378_v30 = vld [vmem:[#allocation2 + $0xa8] sm:$0xff] }
  0x3d   :  { %298 = vmatprep.subr.mxu1 %v204_v54  ;;  %432 = vmatpush1.msra.mxu0 %v385_v23  ;;  %v377_v31 = vld [vmem:[#allocation2 + $0xa0] sm:$0xff]  ;;  %v376_v32 = vld [vmem:[#allocation2 + $0x98] sm:$0xff]  ;;  %v375_v33 = vld [vmem:[#allocation2 + $0x90] sm:$0xff] }
  0x3e   :  { %299 = vmatpush1.msra.mxu1 %v203_v55  ;;  %433 = vmatprep.subr.mxu0 %v384_v24  ;;  %v374_v34 = vld [vmem:[#allocation2 + $0x88] sm:$0xff]  ;;  %v373_v35 = vld [vmem:[#allocation2 + $0x80] sm:$0xff]  ;;  %v400_v21 = vld [vmem:[#allocation2 + $0x158] sm:$0xff] }
  0x3f   :  { %300 = vmatprep.subr.mxu1 %v202_v56  ;;  %434 = vmatpush1.msra.mxu0 %v383_v25  ;;  %v91_v39 = vld [vmem:[%s1659_s6] ss:$4 sm:$0x3]  ;;  %v399_v22 = vld [vmem:[#allocation2 + $0x150] sm:$0xff]  ;;  %v398_v23 = vld [vmem:[#allocation2 + $0x148] sm:$0xff] }
  0x40   :  { %301 = vmatpush1.msra.mxu1 %v201_v57  ;;  %435 = vmatprep.subr.mxu0 %v382_v26  ;;  %v96_v41 = vrot.slane %v91_v39, %v1430_v38  ;;  %v100_v42 = vrot.slane %v91_v39, %v1435_v40  ;;  %v372_v57 = vld [vmem:[#allocation2 + $0x78] sm:$0xff]  ;;  %v401_v20 = vld [vmem:[#allocation2 + $0x160] sm:$0xff]  ;;  %v395_v26 = vld [vmem:[#allocation2 + $0x130] sm:$0xff] }
  0x41   :  { %302 = vmatprep.subr.mxu1 %v200_v58  ;;  %436 = vmatpush1.msra.mxu0 %v381_v27  ;;  %v371_v58 = vld [vmem:[#allocation2 + $0x70] sm:$0xff]  ;;  %v397_v24 = vld [vmem:[#allocation2 + $0x140] sm:$0xff]  ;;  %v396_v25 = vld [vmem:[#allocation2 + $0x138] sm:$0xff] }
  0x42   :  { %303 = vmatpush1.msra.mxu1 %v199_v59  ;;  %437 = vmatprep.subr.mxu0 %v380_v28  ;;  %v370_v59 = vld [vmem:[#allocation2 + $0x68] sm:$0xff]  ;;  %v393_v28 = vld [vmem:[#allocation2 + $0x120] sm:$0xff]  ;;  %v541_v37 = vld [vmem:[#allocation5 + $0xd8] sm:$0xff] }
  0x43   :  { %312 = vmatprep.subr.mxu1 %v254_v60  ;;  %438 = vmatpush1.msra.mxu0 %v379_v29  ;;  %v369_v60 = vld [vmem:[#allocation2 + $0x60] sm:$0xff]  ;;  %v394_v27 = vld [vmem:[#allocation2 + $0x128] sm:$0xff]  ;;  %v392_v29 = vld [vmem:[#allocation2 + $0x118] sm:$0xff] }
  0x44   :  { %313 = vmatpush2.msra.mxu1 %v253_v61  ;;  %439 = vmatprep.subr.mxu0 %v378_v30  ;;  %v368_v61 = vld [vmem:[#allocation2 + $0x58] sm:$0xff]  ;;  %v391_v30 = vld [vmem:[#allocation2 + $0x110] sm:$0xff]  ;;  %v542_v36 = vld [vmem:[#allocation5 + $0xe0] sm:$0xff] }
  0x45   :  { %314 = vmatprep.subr.mxu1 %v252_v62  ;;  %440 = vmatpush1.msra.mxu0 %v377_v31  ;;  %v367_v62 = vld [vmem:[#allocation2 + $0x50] sm:$0xff]  ;;  %v390_v31 = vld [vmem:[#allocation2 + $0x108] sm:$0xff] }
  0x46   :  { %315 = vmatpush2.msra.mxu1 %v251_v63  ;;  %441 = vmatprep.subr.mxu0 %v376_v32  ;;  %v366_v63 = vld [vmem:[#allocation2 + $0x48] sm:$0xff]  ;;  %v389_v32 = vld [vmem:[#allocation2 + $0x100] sm:$0xff]  ;;  %v540_v39 = vld [vmem:[#allocation5 + $0xd0] sm:$0xff] }
  0x47   :  { %316 = vmatprep.subr.mxu1 %v250_v0  ;;  %442 = vmatpush1.msra.mxu0 %v375_v33  ;;  %v365_v0 = vld [vmem:[#allocation2 + $0x40] sm:$0xff]  ;;  %v545_v33 = vld [vmem:[#allocation5 + $0xf8] sm:$0xff] }
  0x48   :  { %317 = vmatpush2.msra.mxu1 %v249_v1  ;;  %443 = vmatprep.subr.mxu0 %v374_v34  ;;  %v364_v1 = vld [vmem:[#allocation2 + $0x38] sm:$0xff]  ;;  %v544_v34 = vld [vmem:[#allocation5 + $0xf0] sm:$0xff] }
  0x49   :  { %318 = vmatprep.subr.mxu1 %v248_v2  ;;  %444 = vmatpush1.msra.mxu0 %v373_v35  ;;  %v363_v2 = vld [vmem:[#allocation2 + $0x30] sm:$0xff]  ;;  %v543_v35 = vld [vmem:[#allocation5 + $0xe8] sm:$0xff] }
  0x4a   :  { %319 = vmatpush2.msra.mxu1 %v247_v3  ;;  %445 = vmatprep.subr.mxu0 %v372_v57  ;;  %v362_v3 = vld [vmem:[#allocation2 + $0x28] sm:$0xff] }
  0x4b   :  { %320 = vmatprep.subr.mxu1 %v246_v4  ;;  %446 = vmatpush1.msra.mxu0 %v371_v58  ;;  %v361_v4 = vld [vmem:[#allocation2 + $0x20] sm:$0xff] }
  0x4c   :  { %321 = vmatpush2.msra.mxu1 %v245_v5  ;;  %447 = vmatprep.subr.mxu0 %v370_v59  ;;  %v360_v5 = vld [vmem:[#allocation2 + $0x18] sm:$0xff] }
  0x4d   :  { %322 = vmatprep.subr.mxu1 %v244_v6  ;;  %448 = vmatpush1.msra.mxu0 %v369_v60  ;;  %v359_v6 = vld [vmem:[#allocation2 + $0x10] sm:$0xff] }
  0x4e   :  { %323 = vmatpush2.msra.mxu1 %v243_v7  ;;  %449 = vmatprep.subr.mxu0 %v368_v61  ;;  %v358_v7 = vld [vmem:[#allocation2 + $0x8] sm:$0xff] }
  0x4f   :  { %324 = vmatprep.subr.mxu1 %v242_v8  ;;  %450 = vmatpush1.msra.mxu0 %v367_v62  ;;  %v357_v8 = vld [vmem:[#allocation2] sm:$0xff] }
  0x50   :  { %325 = vmatpush2.msra.mxu1 %v241_v9  ;;  %451 = vmatprep.subr.mxu0 %v366_v63  ;;  %v412_v9 = vld [vmem:[#allocation2 + $0x1b8] sm:$0xff] }
  0x51   :  { %326 = vmatprep.subr.mxu1 %v240_v10  ;;  %452 = vmatpush1.msra.mxu0 %v365_v0  ;;  %v411_v10 = vld [vmem:[#allocation2 + $0x1b0] sm:$0xff] }
  0x52   :  { %327 = vmatpush2.msra.mxu1 %v239_v11  ;;  %453 = vmatprep.subr.mxu0 %v364_v1  ;;  %v410_v11 = vld [vmem:[#allocation2 + $0x1a8] sm:$0xff] }
  0x53   :  { %328 = vmatprep.subr.mxu1 %v238_v12  ;;  %454 = vmatpush1.msra.mxu0 %v363_v2  ;;  %v409_v12 = vld [vmem:[#allocation2 + $0x1a0] sm:$0xff] }
  0x54   :  { %329 = vmatpush2.msra.mxu1 %v237_v13  ;;  %455 = vmatprep.subr.mxu0 %v362_v3  ;;  %v408_v13 = vld [vmem:[#allocation2 + $0x198] sm:$0xff] }
  0x55   :  { %330 = vmatprep.subr.mxu1 %v236_v14  ;;  %456 = vmatpush1.msra.mxu0 %v361_v4  ;;  %v407_v14 = vld [vmem:[#allocation2 + $0x190] sm:$0xff]  ;;  %v529_v4 = vld [vmem:[#allocation5 + $0x78] sm:$0xff] }
  0x56   :  { %331 = vmatpush2.msra.mxu1 %v235_v15  ;;  %457 = vmatprep.subr.mxu0 %v360_v5  ;;  %v406_v15 = vld [vmem:[#allocation2 + $0x188] sm:$0xff]  ;;  %v528_v5 = vld [vmem:[#allocation5 + $0x70] sm:$0xff] }
  0x57   :  { %332 = vmatprep.subr.mxu1 %v234_v16  ;;  %458 = vmatpush1.msra.mxu0 %v359_v6  ;;  %v405_v16 = vld [vmem:[#allocation2 + $0x180] sm:$0xff]  ;;  %v527_v6 = vld [vmem:[#allocation5 + $0x68] sm:$0xff] }
  0x58   :  { %333 = vmatpush2.msra.mxu1 %v233_v17  ;;  %459 = vmatprep.subr.mxu0 %v358_v7  ;;  %v404_v17 = vld [vmem:[#allocation2 + $0x178] sm:$0xff]  ;;  %v526_v7 = vld [vmem:[#allocation5 + $0x60] sm:$0xff] }
  0x59   :  { %334 = vmatprep.subr.mxu1 %v232_v18  ;;  %460 = vmatpush1.msra.mxu0 %v357_v8  ;;  %v403_v18 = vld [vmem:[#allocation2 + $0x170] sm:$0xff]  ;;  %v525_v8 = vld [vmem:[#allocation5 + $0x58] sm:$0xff] }
  0x5a   :  { %335 = vmatpush2.msra.mxu1 %v231_v19  ;;  %469 = vmatprep.subr.mxu0 %v412_v9  ;;  %v402_v19 = vld [vmem:[#allocation2 + $0x168] sm:$0xff]  ;;  %v524_v9 = vld [vmem:[#allocation5 + $0x50] sm:$0xff] }
  0x5b   :  { %470 = vmatpush2.msra.mxu0 %v411_v10  ;;  %586 = vmatprep.subr.mxu1 %v545_v33  ;;  %v523_v10 = vld [vmem:[#allocation5 + $0x48] sm:$0xff]  ;;  %v556_v33 = vld [vmem:[#allocation5 + $0x150] sm:$0xff] }
  0x5c   :  { %471 = vmatprep.subr.mxu0 %v410_v11  ;;  %v522_v11 = vld [vmem:[#allocation5 + $0x40] sm:$0xff] }
  0x5d   :  { %472 = vmatpush2.msra.mxu0 %v409_v12  ;;  %v521_v12 = vld [vmem:[#allocation5 + $0x38] sm:$0xff] }
  0x5e   :  { %473 = vmatprep.subr.mxu0 %v408_v13  ;;  %v520_v13 = vld [vmem:[#allocation5 + $0x30] sm:$0xff] }
  0x5f   :  { %474 = vmatpush2.msra.mxu0 %v407_v14  ;;  %v519_v14 = vld [vmem:[#allocation5 + $0x28] sm:$0xff] }
  0x60   :  { %475 = vmatprep.subr.mxu0 %v406_v15  ;;  %v518_v15 = vld [vmem:[#allocation5 + $0x20] sm:$0xff] }
  0x61   :  { %476 = vmatpush2.msra.mxu0 %v405_v16  ;;  %v517_v16 = vld [vmem:[#allocation5 + $0x18] sm:$0xff] }
  0x62   :  { %477 = vmatprep.subr.mxu0 %v404_v17  ;;  %v516_v17 = vld [vmem:[#allocation5 + $0x10] sm:$0xff] }
  0x63   :  { %478 = vmatpush2.msra.mxu0 %v403_v18  ;;  %v515_v18 = vld [vmem:[#allocation5 + $0x8] sm:$0xff] }
  0x64   :  { %479 = vmatprep.subr.mxu0 %v402_v19  ;;  %v514_v19 = vld [vmem:[#allocation5] sm:$0xff] }
  0x65   :  { %480 = vmatpush2.msra.mxu0 %v401_v20  ;;  %v569_v20 = vld [vmem:[#allocation5 + $0x1b8] sm:$0xff] }
  0x66   :  { %481 = vmatprep.subr.mxu0 %v400_v21  ;;  %v568_v21 = vld [vmem:[#allocation5 + $0x1b0] sm:$0xff] }
  0x67   :  { %482 = vmatpush2.msra.mxu0 %v399_v22  ;;  %v567_v22 = vld [vmem:[#allocation5 + $0x1a8] sm:$0xff] }
  0x68   :  { %483 = vmatprep.subr.mxu0 %v398_v23  ;;  %v566_v23 = vld [vmem:[#allocation5 + $0x1a0] sm:$0xff] }
  0x69   :  { %484 = vmatpush2.msra.mxu0 %v397_v24  ;;  %v565_v24 = vld [vmem:[#allocation5 + $0x198] sm:$0xff] }
  0x6a   :  { %485 = vmatprep.subr.mxu0 %v396_v25  ;;  %v564_v25 = vld [vmem:[#allocation5 + $0x190] sm:$0xff] }
  0x6b   :  { %486 = vmatpush2.msra.mxu0 %v395_v26  ;;  %v563_v26 = vld [vmem:[#allocation5 + $0x188] sm:$0xff] }
  0x6c   :  { %487 = vmatprep.subr.mxu0 %v394_v27  ;;  %v562_v27 = vld [vmem:[#allocation5 + $0x180] sm:$0xff] }
  0x6d   :  { %488 = vmatpush2.msra.mxu0 %v393_v28  ;;  %v561_v28 = vld [vmem:[#allocation5 + $0x178] sm:$0xff] }
  0x6e   :  { %489 = vmatprep.subr.mxu0 %v392_v29  ;;  %v560_v29 = vld [vmem:[#allocation5 + $0x170] sm:$0xff] }
  0x6f   :  { %490 = vmatpush2.msra.mxu0 %v391_v30  ;;  %v559_v30 = vld [vmem:[#allocation5 + $0x168] sm:$0xff] }
  0x70   :  { %491 = vmatprep.subr.mxu0 %v390_v31  ;;  %v558_v31 = vld [vmem:[#allocation5 + $0x160] sm:$0xff] }
  0x71   :  { %492 = vmatpush2.msra.mxu0 %v389_v32  ;;  %v557_v32 = vld [vmem:[#allocation5 + $0x158] sm:$0xff] }
  0xf8   :  { %v180_v43 = vpop.f32.mrf.mxu0 }
  0xf9   :  { %v181_v44 = vadd.f32 %v180_v43, %v96_v41  ;;  %v539_v41 = vld [vmem:[#allocation5 + $0xc8] sm:$0xff]  ;;  %v537_v43 = vld [vmem:[#allocation5 + $0xb8] sm:$0xff] }
  0xfa   :  { %v182_v45 = vpop.f32.mrf.mxu0 }
  0xfb   :  { %v949_v46 = vmul.f32 -1.442695, %v181_v44  ;;  %v183_v47 = vadd.f32 %v182_v45, %v100_v42  ;;  %v538_v42 = vld [vmem:[#allocation5 + $0xc0] sm:$0xff]  ;;  %v535_v45 = vld [vmem:[#allocation5 + $0xa8] sm:$0xff] }
  0xfd   :  { %975 = vpow2.f32 %v949_v46  ;;  %v950_v48 = vmul.f32 -1.442695, %v183_v47  ;;  %v534_v46 = vld [vmem:[#allocation5 + $0xa0] sm:$0xff] }
  0xff   :  { %977 = vpow2.f32 %v950_v48  ;;  %v532_v48 = vld [vmem:[#allocation5 + $0x90] sm:$0xff] }
 0x10a   :  { %v976_v49 = vpop.eup %975 }
 0x10b   :  { %v191_v50 = vadd.f32 1.0, %v976_v49  ;;  %v531_v49 = vld [vmem:[#allocation5 + $0x88] sm:$0xff] }
 0x10c   :  { %v978_v51 = vpop.eup %977 }
 0x10d   :  { %v192_v52 = vadd.f32 1.0, %v978_v51  ;;  %979 = vrcp.f32 %v191_v50  ;;  %v530_v50 = vld [vmem:[#allocation5 + $0x80] sm:$0xff] }
 0x10e   :  { %v951_v51 = vld [vmem:[%s1659_s6 + $0x1] ss:$4 sm:$0x3] }
 0x10f   :  { %981 = vrcp.f32 %v192_v52  ;;  %v261_v52 = vrot.slane %v951_v51, %v1430_v38 }
 0x11a   :  { %v980_v53 = vpop.eup %979 }
 0x11b   :  { %v197_v56 = vmul.f32 %v980_v53, %v181_v44  ;;  %v536_v44 = vld [vmem:[#allocation5 + $0xb0] sm:$0xff]  ;;  %v265_v53 = vrot.slane %v951_v51, %v1435_v40 }
 0x11c   :  { %v982_v54 = vpop.eup %981  ;;  %v697_v51 = vld [vmem:[%s1658_s5 + $0xd0] sm:$0xff] }
 0x11d   :  { %v198_v55 = vmul.f32 %v982_v54, %v183_v47  ;;  %v533_v47 = vld [vmem:[#allocation5 + $0x98] sm:$0xff] }
 0x11f   :  { %952 = vmatprep.mubr.msk.f32.mxu1 %vm268_vm2, %v198_v55 }
 0x120   :  { %337 = vmatmul.mubr.f32.vlgmr.msra.gmra.mxu1 %v197_v56 }
 0x121   :  { %587 = vmatpush1.msra.mxu1 %v544_v34  ;;  %v555_v34 = vld [vmem:[#allocation5 + $0x148] sm:$0xff] }
 0x122   :  { %588 = vmatprep.subr.mxu1 %v543_v35  ;;  %v554_v35 = vld [vmem:[#allocation5 + $0x140] sm:$0xff] }
 0x123   :  { %589 = vmatpush1.msra.mxu1 %v542_v36  ;;  %v553_v36 = vld [vmem:[#allocation5 + $0x138] sm:$0xff] }
 0x124   :  { %590 = vmatprep.subr.mxu1 %v541_v37  ;;  %v552_v37 = vld [vmem:[#allocation5 + $0x130] sm:$0xff] }
 0x125   :  { %591 = vmatpush1.msra.mxu1 %v540_v39  ;;  %v551_v39 = vld [vmem:[#allocation5 + $0x128] sm:$0xff] }
 0x126   :  { %592 = vmatprep.subr.mxu1 %v539_v41  ;;  %v550_v41 = vld [vmem:[#allocation5 + $0x120] sm:$0xff] }
 0x127   :  { %593 = vmatpush1.msra.mxu1 %v538_v42  ;;  %v549_v42 = vld [vmem:[#allocation5 + $0x118] sm:$0xff] }
 0x128   :  { %594 = vmatprep.subr.mxu1 %v537_v43  ;;  %v548_v43 = vld [vmem:[#allocation5 + $0x110] sm:$0xff] }
 0x129   :  { %595 = vmatpush1.msra.mxu1 %v536_v44  ;;  %v547_v44 = vld [vmem:[#allocation5 + $0x108] sm:$0xff] }
 0x12a   :  { %596 = vmatprep.subr.mxu1 %v535_v45  ;;  %v546_v45 = vld [vmem:[#allocation5 + $0x100] sm:$0xff] }
 0x12b   :  { %597 = vmatpush1.msra.mxu1 %v534_v46  ;;  %v702_v46 = vld [vmem:[%s1658_s5 + $0xf8] sm:$0xff] }
 0x12c   :  { %598 = vmatprep.subr.mxu1 %v533_v47  ;;  %v701_v47 = vld [vmem:[%s1658_s5 + $0xf0] sm:$0xff]  ;;  %742 = vmatprep.subr.mxu0 %v702_v46 }
 0x12d   :  { %599 = vmatpush1.msra.mxu1 %v532_v48  ;;  %v700_v48 = vld [vmem:[%s1658_s5 + $0xe8] sm:$0xff]  ;;  %v713_v46 = vld [vmem:[%s1658_s5 + $0x150] sm:$0xff] }
 0x12e   :  { %600 = vmatprep.subr.mxu1 %v531_v49  ;;  %v699_v49 = vld [vmem:[%s1658_s5 + $0xe0] sm:$0xff] }
 0x12f   :  { %601 = vmatpush1.msra.mxu1 %v530_v50  ;;  %v698_v50 = vld [vmem:[%s1658_s5 + $0xd8] sm:$0xff] }
 0x130   :  { %602 = vmatprep.subr.mxu1 %v529_v4 }
 0x131   :  { %603 = vmatpush1.msra.mxu1 %v528_v5 }
 0x132   :  { %604 = vmatprep.subr.mxu1 %v527_v6 }
 0x133   :  { %605 = vmatpush1.msra.mxu1 %v526_v7 }
 0x134   :  { %606 = vmatprep.subr.mxu1 %v525_v8 }
 0x135   :  { %607 = vmatpush1.msra.mxu1 %v524_v9 }
 0x136   :  { %608 = vmatprep.subr.mxu1 %v523_v10 }
 0x137   :  { %609 = vmatpush1.msra.mxu1 %v522_v11 }
 0x138   :  { %610 = vmatprep.subr.mxu1 %v521_v12 }
 0x139   :  { %611 = vmatpush1.msra.mxu1 %v520_v13 }
 0x13a   :  { %612 = vmatprep.subr.mxu1 %v519_v14 }
 0x13b   :  { %613 = vmatpush1.msra.mxu1 %v518_v15  ;;  %v686_v15 = vld [vmem:[%s1658_s5 + $0x78] sm:$0xff] }
 0x13c   :  { %614 = vmatprep.subr.mxu1 %v517_v16  ;;  %v685_v16 = vld [vmem:[%s1658_s5 + $0x70] sm:$0xff] }
 0x13d   :  { %615 = vmatpush1.msra.mxu1 %v516_v17  ;;  %v684_v17 = vld [vmem:[%s1658_s5 + $0x68] sm:$0xff] }
 0x13e   :  { %616 = vmatprep.subr.mxu1 %v515_v18  ;;  %v683_v18 = vld [vmem:[%s1658_s5 + $0x60] sm:$0xff] }
 0x13f   :  { %617 = vmatpush1.msra.mxu1 %v514_v19  ;;  %v682_v19 = vld [vmem:[%s1658_s5 + $0x58] sm:$0xff] }
 0x140   :  { %626 = vmatprep.subr.mxu1 %v569_v20  ;;  %v681_v20 = vld [vmem:[%s1658_s5 + $0x50] sm:$0xff] }
 0x141   :  { %627 = vmatpush2.msra.mxu1 %v568_v21  ;;  %v680_v21 = vld [vmem:[%s1658_s5 + $0x48] sm:$0xff] }
 0x142   :  { %628 = vmatprep.subr.mxu1 %v567_v22  ;;  %v679_v22 = vld [vmem:[%s1658_s5 + $0x40] sm:$0xff] }
 0x143   :  { %629 = vmatpush2.msra.mxu1 %v566_v23  ;;  %v678_v23 = vld [vmem:[%s1658_s5 + $0x38] sm:$0xff] }
 0x144   :  { %630 = vmatprep.subr.mxu1 %v565_v24  ;;  %v677_v24 = vld [vmem:[%s1658_s5 + $0x30] sm:$0xff] }
 0x145   :  { %631 = vmatpush2.msra.mxu1 %v564_v25  ;;  %v676_v25 = vld [vmem:[%s1658_s5 + $0x28] sm:$0xff] }
 0x146   :  { %632 = vmatprep.subr.mxu1 %v563_v26  ;;  %v675_v26 = vld [vmem:[%s1658_s5 + $0x20] sm:$0xff] }
 0x147   :  { %633 = vmatpush2.msra.mxu1 %v562_v27  ;;  %v674_v27 = vld [vmem:[%s1658_s5 + $0x18] sm:$0xff] }
 0x148   :  { %634 = vmatprep.subr.mxu1 %v561_v28  ;;  %v673_v28 = vld [vmem:[%s1658_s5 + $0x10] sm:$0xff] }
 0x149   :  { %635 = vmatpush2.msra.mxu1 %v560_v29  ;;  %v672_v29 = vld [vmem:[%s1658_s5 + $0x8] sm:$0xff] }
 0x14a   :  { %636 = vmatprep.subr.mxu1 %v559_v30  ;;  %v671_v30 = vld [vmem:[%s1658_s5] sm:$0xff] }
 0x14b   :  { %637 = vmatpush2.msra.mxu1 %v558_v31  ;;  %v726_v31 = vld [vmem:[%s1658_s5 + $0x1b8] sm:$0xff] }
 0x14c   :  { %638 = vmatprep.subr.mxu1 %v557_v32  ;;  %v725_v32 = vld [vmem:[%s1658_s5 + $0x1b0] sm:$0xff] }
 0x14d   :  { %639 = vmatpush2.msra.mxu1 %v556_v33  ;;  %v724_v33 = vld [vmem:[%s1658_s5 + $0x1a8] sm:$0xff] }
 0x14e   :  { %640 = vmatprep.subr.mxu1 %v555_v34  ;;  %v723_v34 = vld [vmem:[%s1658_s5 + $0x1a0] sm:$0xff] }
 0x14f   :  { %641 = vmatpush2.msra.mxu1 %v554_v35  ;;  %v722_v35 = vld [vmem:[%s1658_s5 + $0x198] sm:$0xff] }
 0x150   :  { %642 = vmatprep.subr.mxu1 %v553_v36  ;;  %v721_v36 = vld [vmem:[%s1658_s5 + $0x190] sm:$0xff] }
 0x151   :  { %643 = vmatpush2.msra.mxu1 %v552_v37  ;;  %v720_v37 = vld [vmem:[%s1658_s5 + $0x188] sm:$0xff] }
 0x152   :  { %644 = vmatprep.subr.mxu1 %v551_v39  ;;  %v719_v39 = vld [vmem:[%s1658_s5 + $0x180] sm:$0xff] }
 0x153   :  { %645 = vmatpush2.msra.mxu1 %v550_v41  ;;  %v718_v41 = vld [vmem:[%s1658_s5 + $0x178] sm:$0xff] }
 0x154   :  { %646 = vmatprep.subr.mxu1 %v549_v42  ;;  %v717_v42 = vld [vmem:[%s1658_s5 + $0x170] sm:$0xff] }
 0x155   :  { %647 = vmatpush2.msra.mxu1 %v548_v43  ;;  %v716_v43 = vld [vmem:[%s1658_s5 + $0x168] sm:$0xff] }
 0x156   :  { %648 = vmatprep.subr.mxu1 %v547_v44  ;;  %v715_v44 = vld [vmem:[%s1658_s5 + $0x160] sm:$0xff] }
 0x157   :  { %649 = vmatpush2.msra.mxu1 %v546_v45  ;;  %v714_v45 = vld [vmem:[%s1658_s5 + $0x158] sm:$0xff] }
 0x1e0   :  { %v338_v54 = vpop.f32.mrf.mxu1 }
 0x1e1   :  { %v339_v55 = vadd.f32 %v338_v54, %v261_v52  ;;  %v696_v52 = vld [vmem:[%s1658_s5 + $0xc8] sm:$0xff]  ;;  %v694_v54 = vld [vmem:[%s1658_s5 + $0xb8] sm:$0xff] }
 0x1e2   :  { %v340_v56 = vpop.f32.mrf.mxu1 }
 0x1e3   :  { %v953_v57 = vmul.f32 -1.442695, %v339_v55  ;;  %v341_v58 = vadd.f32 %v340_v56, %v265_v53  ;;  %v695_v53 = vld [vmem:[%s1658_s5 + $0xc0] sm:$0xff]  ;;  %v692_v56 = vld [vmem:[%s1658_s5 + $0xa8] sm:$0xff] }
 0x1e5   :  { %983 = vpow2.f32 %v953_v57  ;;  %v954_v59 = vmul.f32 -1.442695, %v341_v58  ;;  %v691_v57 = vld [vmem:[%s1658_s5 + $0xa0] sm:$0xff] }
 0x1e7   :  { %985 = vpow2.f32 %v954_v59  ;;  %v689_v59 = vld [vmem:[%s1658_s5 + $0x90] sm:$0xff] }
 0x1f2   :  { %v984_v60 = vpop.eup %983 }
 0x1f3   :  { %v349_v61 = vadd.f32 1.0, %v984_v60  ;;  %v688_v60 = vld [vmem:[%s1658_s5 + $0x88] sm:$0xff] }
 0x1f4   :  { %v986_v62 = vpop.eup %985 }
 0x1f5   :  { %v350_v63 = vadd.f32 1.0, %v986_v62  ;;  %987 = vrcp.f32 %v349_v61  ;;  %v687_v61 = vld [vmem:[%s1658_s5 + $0x80] sm:$0xff] }
 0x1f6   :  { %v955_v62 = vld [vmem:[%s1659_s6 + $0x2] ss:$4 sm:$0x3] }
 0x1f7   :  { %989 = vrcp.f32 %v350_v63  ;;  %v419_v63 = vrot.slane %v955_v62, %v1430_v38 }
 0x202   :  { %v988_v0 = vpop.eup %987 }
 0x203   :  { %v355_v3 = vmul.f32 %v988_v0, %v339_v55  ;;  %v693_v55 = vld [vmem:[%s1658_s5 + $0xb0] sm:$0xff]  ;;  %v423_v0 = vrot.slane %v955_v62, %v1435_v40 }
 0x204   :  { %v990_v1 = vpop.eup %989 }
 0x205   :  { %v356_v2 = vmul.f32 %v990_v1, %v341_v58  ;;  %v690_v58 = vld [vmem:[%s1658_s5 + $0x98] sm:$0xff] }
 0x207   :  { %956 = vmatprep.mubr.msk.f32.mxu0 %vm268_vm2, %v356_v2 }
 0x208   :  { %494 = vmatmul.mubr.f32.vlgmr.msra.gmra.mxu0 %v355_v3 }
 0x209   :  { %743 = vmatpush1.msra.mxu0 %v701_v47  ;;  %v712_v47 = vld [vmem:[%s1658_s5 + $0x148] sm:$0xff] }
 0x20a   :  { %744 = vmatprep.subr.mxu0 %v700_v48  ;;  %v711_v48 = vld [vmem:[%s1658_s5 + $0x140] sm:$0xff] }
 0x20b   :  { %745 = vmatpush1.msra.mxu0 %v699_v49  ;;  %v710_v49 = vld [vmem:[%s1658_s5 + $0x138] sm:$0xff] }
 0x20c   :  { %746 = vmatprep.subr.mxu0 %v698_v50  ;;  %v709_v50 = vld [vmem:[%s1658_s5 + $0x130] sm:$0xff] }
 0x20d   :  { %747 = vmatpush1.msra.mxu0 %v697_v51  ;;  %v708_v51 = vld [vmem:[%s1658_s5 + $0x128] sm:$0xff] }
 0x20e   :  { %748 = vmatprep.subr.mxu0 %v696_v52  ;;  %v707_v52 = vld [vmem:[%s1658_s5 + $0x120] sm:$0xff] }
 0x20f   :  { %749 = vmatpush1.msra.mxu0 %v695_v53  ;;  %v706_v53 = vld [vmem:[%s1658_s5 + $0x118] sm:$0xff] }
 0x210   :  { %750 = vmatprep.subr.mxu0 %v694_v54  ;;  %v705_v54 = vld [vmem:[%s1658_s5 + $0x110] sm:$0xff] }
 0x211   :  { %751 = vmatpush1.msra.mxu0 %v693_v55  ;;  %v704_v55 = vld [vmem:[%s1658_s5 + $0x108] sm:$0xff] }
 0x212   :  { %752 = vmatprep.subr.mxu0 %v692_v56  ;;  %v703_v56 = vld [vmem:[%s1658_s5 + $0x100] sm:$0xff] }
 0x213   :  { %753 = vmatpush1.msra.mxu0 %v691_v57  ;;  %v964_v57 = vld [vmem:[%s1661_s8] ss:$0 sm:$0xff] }
 0x214   :  { %754 = vmatprep.subr.mxu0 %v690_v58  ;;  %820 = vrot.lane.b32.xlu0 %v964_v57, %s1116_s25  ;;  %v959_v58 = vld [vmem:[%s1659_s6 + $0x3] ss:$4 sm:$0x3] }
 0x215   :  { %755 = vmatpush1.msra.mxu0 %v689_v59  ;;  %v576_v59 = vrot.slane %v959_v58, %v1430_v38 }
 0x216   :  { %756 = vmatprep.subr.mxu0 %v688_v60  ;;  %v580_v60 = vrot.slane %v959_v58, %v1435_v40 }
 0x217   :  { %757 = vmatpush1.msra.mxu0 %v687_v61 }
 0x218   :  { %758 = vmatprep.subr.mxu0 %v686_v15 }
 0x219   :  { %759 = vmatpush1.msra.mxu0 %v685_v16 }
 0x21a   :  { %760 = vmatprep.subr.mxu0 %v684_v17 }
 0x21b   :  { %761 = vmatpush1.msra.mxu0 %v683_v18 }
 0x21c   :  { %762 = vmatprep.subr.mxu0 %v682_v19 }
 0x21d   :  { %763 = vmatpush1.msra.mxu0 %v681_v20 }
 0x21e   :  { %764 = vmatprep.subr.mxu0 %v680_v21 }
 0x21f   :  { %765 = vmatpush1.msra.mxu0 %v679_v22 }
 0x220   :  { %766 = vmatprep.subr.mxu0 %v678_v23 }
 0x221   :  { %767 = vmatpush1.msra.mxu0 %v677_v24 }
 0x222   :  { %768 = vmatprep.subr.mxu0 %v676_v25 }
 0x223   :  { %769 = vmatpush1.msra.mxu0 %v675_v26 }
 0x224   :  { %770 = vmatprep.subr.mxu0 %v674_v27 }
 0x225   :  { %771 = vmatpush1.msra.mxu0 %v673_v28 }
 0x226   :  { %772 = vmatprep.subr.mxu0 %v672_v29 }
 0x227   :  { %773 = vmatpush1.msra.mxu0 %v671_v30 }
 0x228   :  { %782 = vmatprep.subr.mxu0 %v726_v31 }
 0x229   :  { %783 = vmatpush2.msra.mxu0 %v725_v32 }
 0x22a   :  { %784 = vmatprep.subr.mxu0 %v724_v33 }
 0x22b   :  { %785 = vmatpush2.msra.mxu0 %v723_v34 }
 0x22c   :  { %786 = vmatprep.subr.mxu0 %v722_v35 }
 0x22d   :  { %787 = vmatpush2.msra.mxu0 %v721_v36 }
 0x22e   :  { %788 = vmatprep.subr.mxu0 %v720_v37 }
 0x22f   :  { %789 = vmatpush2.msra.mxu0 %v719_v39 }
 0x230   :  { %790 = vmatprep.subr.mxu0 %v718_v41 }
 0x231   :  { %791 = vmatpush2.msra.mxu0 %v717_v42 }
 0x232   :  { %792 = vmatprep.subr.mxu0 %v716_v43 }
 0x233   :  { %793 = vmatpush2.msra.mxu0 %v715_v44 }
 0x234   :  { %794 = vmatprep.subr.mxu0 %v714_v45 }
 0x235   :  { %795 = vmatpush2.msra.mxu0 %v713_v46 }
 0x236   :  { %796 = vmatprep.subr.mxu0 %v712_v47 }
 0x237   :  { %797 = vmatpush2.msra.mxu0 %v711_v48 }
 0x238   :  { %798 = vmatprep.subr.mxu0 %v710_v49 }
 0x239   :  { %799 = vmatpush2.msra.mxu0 %v709_v50 }
 0x23a   :  { %800 = vmatprep.subr.mxu0 %v708_v51 }
 0x23b   :  { %801 = vmatpush2.msra.mxu0 %v707_v52 }
 0x23c   :  { %802 = vmatprep.subr.mxu0 %v706_v53  ;;  %v965_v53 = vld [vmem:[%s1661_s8 + $0x1] ss:$0 sm:$0xff]  ;;  %s1118_s8 = smov [#allocation7]  }
 0x23d   :  { %803 = vmatpush2.msra.mxu0 %v705_v54  ;;  %s922_s2 = sshll.u32 %s1118_s8, 4  ;;  %s923_s2 = int_to_ptr.vmem [resolvable:$true] %s922_s2 }
 0x23e   :  { %804 = vmatprep.subr.mxu0 %v704_v55  ;;  %s1063_s28 = scalar_lea.vmem %s923_s2, 128  ;;  %p1068_p11 = scmp.lt.s32.totalorder %s923_s2, %s923_s2 }
 0x23f   :  { %805 = vmatpush2.msra.mxu0 %v703_v56  ;;  %p1064_p10 = scmp.ne.s32.totalorder %s923_s2, %s1063_s28  ;;  %p1069_p12 = scmp.lt.s32.totalorder %s1063_s28, %s1063_s28 }
 0x241   :  { %p1070_p13 = por %p1069_p12, %p1068_p11 }
 0x243   :  { %p1071_p0 = pnand %p1070_p13, %p1064_p10 }
 0x286   :  { %v821_v15 = vpop.permute.xlu0 %820 }
 0x2c8   :  { %v495_v1 = vpop.f32.mrf.mxu0 }
 0x2c9   :  { %v496_v2 = vadd.f32 %v495_v1, %v419_v63 }
 0x2ca   :  { %v497_v3 = vpop.f32.mrf.mxu0 }
 0x2cb   :  { %v957_v4 = vmul.f32 -1.442695, %v496_v2  ;;  %v498_v5 = vadd.f32 %v497_v3, %v423_v0 }
 0x2cd   :  { %991 = vpow2.f32 %v957_v4  ;;  %v958_v6 = vmul.f32 -1.442695, %v498_v5 }
 0x2cf   :  { %993 = vpow2.f32 %v958_v6 }
 0x2da   :  { %v992_v7 = vpop.eup %991 }
 0x2db   :  { %v506_v8 = vadd.f32 1.0, %v992_v7 }
 0x2dc   :  { %v994_v9 = vpop.eup %993 }
 0x2dd   :  { %v507_v10 = vadd.f32 1.0, %v994_v9  ;;  %995 = vrcp.f32 %v506_v8 }
 0x2df   :  { %997 = vrcp.f32 %v507_v10 }
 0x2ea   :  { %v996_v11 = vpop.eup %995 }
 0x2eb   :  { %v512_v14 = vmul.f32 %v996_v11, %v496_v2  ;;  %v727_v11 = vld [vmem:[%s1660_s7] sm:$0x3]  ;;  %s1117_s7 = smov 44  }
 0x2ec   :  { %v998_v12 = vpop.eup %997 }
 0x2ed   :  { %v513_v13 = vmul.f32 %v998_v12, %v498_v5  ;;  %v732_v12 = vrot.slane %v727_v11, %v1430_v38 }
 0x2ef   :  { %960 = vmatprep.mubr.msk.f32.mxu1 %vm268_vm2, %v513_v13  ;;  %v736_v13 = vrot.slane %v727_v11, %v1435_v40 }
 0x2f0   :  { %651 = vmatmul.mubr.f32.vlgmr.msra.gmra.mxu1 %v512_v14 }
 0x3b0   :  { %v652_v61 = vpop.f32.mrf.mxu1 }
 0x3b1   :  { %v653_v62 = vadd.f32 %v652_v61, %v576_v59 }
 0x3b2   :  { %v654_v63 = vpop.f32.mrf.mxu1 }
 0x3b3   :  { %v961_v0 = vmul.f32 -1.442695, %v653_v62  ;;  %v655_v1 = vadd.f32 %v654_v63, %v580_v60 }
 0x3b5   :  { %999 = vpow2.f32 %v961_v0  ;;  %v962_v2 = vmul.f32 -1.442695, %v655_v1 }
 0x3b7   :  { %1001 = vpow2.f32 %v962_v2 }
 0x3c2   :  { %v1000_v3 = vpop.eup %999 }
 0x3c3   :  { %v663_v4 = vadd.f32 1.0, %v1000_v3 }
 0x3c4   :  { %v1002_v5 = vpop.eup %1001 }
 0x3c5   :  { %v664_v6 = vadd.f32 1.0, %v1002_v5  ;;  %1003 = vrcp.f32 %v663_v4 }
 0x3c7   :  { %1005 = vrcp.f32 %v664_v6 }
 0x3d2   :  { %v1004_v7 = vpop.eup %1003 }
 0x3d3   :  { %v669_v10 = vmul.f32 %v1004_v7, %v653_v62 }
 0x3d4   :  { %v1006_v8 = vpop.eup %1005 }
 0x3d5   :  { %v670_v9 = vmul.f32 %v1006_v8, %v655_v1 }
 0x3d7   :  { %963 = vmatprep.mubr.msk.f32.mxu0 %vm268_vm2, %v670_v9 }
 0x3d8   :  { %807 = vmatmul.mubr.f32.vlgmr.msra.gmra.mxu0 %v669_v10 }
 0x498   :  { %v808_v14 = vpop.f32.mrf.mxu0 }
 0x499   :  { %v809_v16 = vadd.f32 %v808_v14, %v732_v12 }
 0x49a   :  { %v810_v17 = vpop.f32.mrf.mxu0 }
 0x49b   :  { %v823_v18 = vsub.f32 %v809_v16, %v821_v15  ;;  %v811_v19 = vadd.f32 %v810_v17, %v736_v13  ;;  %902 = vst.msk [vmem:[#allocation7] sm:$0xff] %vm901_vm3, %v809_v16 }
 0x49d   :  { %v831_v20 = vand.u32 2147483647, %v823_v18  ;;  %v824_v21 = vsub.f32 %v811_v19, %v821_v15  ;;  %v825_v41 = vmax.f32 %v823_v18, 0.0  ;;  %vm827_vm6 = vcmp.ne.f32.partialorder %v823_v18, %v823_v18 }
 0x49f   :  { %v833_v22 = vsub.f32 0.0, %v831_v20  ;;  %v832_v23 = vand.u32 2147483647, %v824_v21  ;;  %v826_v46 = vmax.f32 %v824_v21, 0.0  ;;  %vm828_vm7 = vcmp.ne.f32.partialorder %v824_v21, %v824_v21 }
 0x4a1   :  { %v835_v24 = vmul.f32 1.442695, %v833_v22  ;;  %v834_v25 = vsub.f32 0.0, %v832_v23 }
 0x4a3   :  { %1007 = vpow2.f32 %v835_v24  ;;  %v837_v26 = vmul.f32 1.442695, %v834_v25 }
 0x4a5   :  { %1009 = vpow2.f32 %v837_v26 }
 0x4b0   :  { %v1008_v38 = vpop.eup %1007 }
 0x4b1   :  { %v839_v40 = vadd.f32 1.0, %v1008_v38  ;;  %v842_v29 = vmul.f32 -0.5, %v1008_v38  ;;  %v845_v32 = vand.u32 2147483647, %v1008_v38 }
 0x4b2   :  { %v1010_v27 = vpop.eup %1009 }
 0x4b3   :  { %1011 = vlog2.f32 %v839_v40  ;;  %v848_v28 = vadd.f32 1.0, %v1010_v27  ;;  %v851_v30 = vmul.f32 -0.5, %v1010_v27  ;;  %v843_v31 = vadd.f32 1.0, %v842_v29 }
 0x4b4   :  { %v854_v35 = vand.u32 2147483647, %v1010_v27  ;;  %vm846_vm4 = vcmp.lt.f32.partialorder %v845_v32, 0.0004427343 }
 0x4b5   :  { %1013 = vlog2.f32 %v848_v28  ;;  %v852_v33 = vadd.f32 1.0, %v851_v30  ;;  %v844_v37 = vmul.f32 %v1008_v38, %v843_v31 }
 0x4b6   :  { %vm855_vm5 = vcmp.lt.f32.partialorder %v854_v35, 0.0004427343 }
 0x4b7   :  { %v853_v44 = vmul.f32 %v1010_v27, %v852_v33 }
 0x4c0   :  { %v1012_v34 = vpop.eup %1011 }
 0x4c1   :  { %v841_v36 = vmul.f32 0.6931472, %v1012_v34 }
 0x4c2   :  { %v1014_v39 = vpop.eup %1013 }
 0x4c3   :  { %v847_v42 = vsel %vm846_vm4, %v844_v37, %v841_v36  ;;  %v850_v43 = vmul.f32 0.6931472, %v1014_v39 }
 0x4c4   :  { %v857_v45 = vadd.f32 %v847_v42, %v825_v41 }
 0x4c5   :  { %v856_v47 = vsel %vm855_vm5, %v853_v44, %v850_v43 }
 0x4c6   :  { %v859_v48 = vsel %vm827_vm6, %v823_v18, %v857_v45  ;;  %v858_v49 = vadd.f32 %v856_v47, %v826_v46 }
 0x4c7   :  { %v861_v50 = vsub.f32 %v809_v16, %v859_v48 }
 0x4c8   :  { %v860_v51 = vsel %vm828_vm7, %v824_v21, %v858_v49 }
 0x4c9   :  { %869 = vrot.lane.b32.xlu0 %v861_v50, %s1117_s7  ;;  %v862_v52 = vsub.f32 %v811_v19, %v860_v51 }
 0x4cb   :  { %871 = vrot.lane.b32.xlu1 %v862_v52, %s1117_s7 }
 0x53b   :  { %v870_v54 = vpop.permute.xlu0 %869 }
 0x53d   :  { %v872_v55 = vpop.permute.xlu1 %871 }
 0x53e   :  { %v874_v56 = vsel %vm873_vm8, %v870_v54, %v872_v55 }
 0x53f   :  { %v876_v57 = vsub.f32 %v965_v53, %v874_v56 }
 0x541   :  { %v880_v58 = vand.u32 2147483647, %v876_v57  ;;  %v877_v5 = vmax.f32 %v876_v57, 0.0  ;;  %vm878_vm10 = vcmp.ne.f32.partialorder %v876_v57, %v876_v57 }
 0x543   :  { %v881_v59 = vsub.f32 0.0, %v880_v58 }
 0x545   :  { %v882_v60 = vmul.f32 1.442695, %v881_v59 }
 0x547   :  { %1015 = vpow2.f32 %v882_v60 }
 0x554   :  { %v1016_v61 = vpop.eup %1015 }
 0x555   :  { %v884_v62 = vadd.f32 1.0, %v1016_v61  ;;  %v887_v63 = vmul.f32 -0.5, %v1016_v61  ;;  %v890_v1 = vand.u32 2147483647, %v1016_v61 }
 0x557   :  { %1017 = vlog2.f32 %v884_v62  ;;  %v888_v0 = vadd.f32 1.0, %v887_v63  ;;  %vm891_vm9 = vcmp.lt.f32.partialorder %v890_v1, 0.0004427343 }
 0x559   :  { %v889_v4 = vmul.f32 %v1016_v61, %v888_v0 }
 0x564   :  { %v1018_v2 = vpop.eup %1017 }
 0x565   :  { %v886_v3 = vmul.f32 0.6931472, %v1018_v2 }
 0x567   :  { %v892_v6 = vsel %vm891_vm9, %v889_v4, %v886_v3 }
 0x568   :  { %v893_v7 = vadd.f32 %v892_v6, %v877_v5 }
 0x56a   :  { %v894_v8 = vsel %vm878_vm10, %v876_v57, %v893_v7 }
 0x56b   :  { %896 = vrot.lane.b32.xlu1 %v894_v8, %s1116_s25 }
 0x5dd   :  { %v897_v9 = vpop.permute.xlu1 %896 }
 0x5de   :  { %v899_v10 = vadd.f32 %v897_v9, %v861_v50  ;;  %v900_v11 = vadd.f32 %v897_v9, %v862_v52 }
 0x5e0   :  { %v903_v12 = vmul.f32 1.442695, %v899_v10  ;;  %v905_v13 = vmul.f32 1.442695, %v900_v11 }
 0x5e2   :  { %1019 = vpow2.f32 %v903_v12 }
 0x5e3   :  { %1021 = vpow2.f32 %v905_v13 }
 0x5e4   :  { %1074 = shalt.err (!%p1071_p0)
}
 0x5e5   :  { %925 = dma.vmem_to_hbm [thread:$0]  %s923_s2, 128, %s1662_s9, [#allocation4]  }
 0x5e6   :  { %s1119_s30 = smov [#allocation8]  }
 0x5e7   :  { %s932_s11 = sshll.u32 %s1119_s30, 4  ;;  %s933_s11 = int_to_ptr.vmem [resolvable:$true] %s932_s11 }
 0x5e8   :  { %s1083_s12 = scalar_lea.vmem %s933_s11, 128  ;;  %p1088_p2 = scmp.lt.s32.totalorder %s933_s11, %s933_s11 }
 0x5e9   :  { %p1084_p1 = scmp.ne.s32.totalorder %s933_s11, %s1083_s12  ;;  %p1089_p3 = scmp.lt.s32.totalorder %s1083_s12, %s1083_s12 }
 0x5eb   :  { %p1090_p4 = por %p1089_p3, %p1088_p2 }
 0x5ed   :  { %p1091_p5 = pnand %p1090_p4, %p1084_p1 }
 0x5ef   :  { %v1020_v14 = vpop.eup %1019 }
 0x5f0   :  { %v1022_v15 = vpop.eup %1021  ;;  %909 = vrot.lane.b32.xlu0 %v1020_v14, %s1117_s7 }
 0x5f1   :  { %911 = vrot.lane.b32.xlu1 %v1022_v15, %s1117_s7 }
 0x662   :  { %v910_v16 = vpop.permute.xlu0 %909 }
 0x663   :  { %v912_v17 = vpop.permute.xlu1 %911 }
 0x664   :  { %v913_v18 = vsel %vm873_vm8, %v910_v16, %v912_v17 }
 0x665   :  { %915 = vst.msk [vmem:[#allocation8] sm:$0xff] %vm901_vm3, %v913_v18 }
 0x666   :  { %1094 = shalt.err (!%p1091_p5)
}
 0x667   :  { %935 = dma.vmem_to_hbm [thread:$0]  %s933_s11, 128, %s1663_s10, [#allocation9]  }
 0x668   :  { %1107 = dma.done.wait [#allocation4], 128  }
 0x669   :  { %1108 = vsyncadd [#allocation4], 4294967168 }
 0x66a   :  { %1109 = dma.done.wait [#allocation9], 128  }
 0x66b   :  { %1110 = vsyncadd [#allocation9], 4294967168 }
 0x66c   :  { %942 = vsyncpa [#allocation3], 1 }
 0x66d   :  { %943 = vsyncpa [#allocation6], 1 }
 0x66e   :  { %944 = vsyncpa [#allocation4], 1 }
 0x66f   :  { %945 = vsyncpa [#allocation9], 1 }

</bundles_post_ra>
